<compile_context>
chip_gen: v7x
topology: tpu7x:2x2x1
jax: 0.10.0
libtpu: 0.0.40
codegen_flags: <defaults>
</compile_context>

<pallas_src>
import jax
import jax.numpy as jnp
from jax.experimental import pallas as pl
from jax.experimental.pallas import tpu as pltpu

# ---- config (cfg.LOSSES.MULTI_SIMILARITY_LOSS.*), deterministic in-script ----
THRESH = 0.5
MARGIN = 0.1          # unused in the reference forward()
SCALE_POS = 2.0
SCALE_NEG = 40.0
EPSILON = 1e-5


def _round_up(x, m):
    return ((x + m - 1) // m) * m


def _vmem_limit_bytes(TM, TN, D_pad):
    """Scoped-VMEM budget: actual buffers + intermediates, with headroom."""
    f32 = 4
    col_buf = 2 * TM * D_pad * f32            # double-buffered query tile
    row_buf = 2 * D_pad * TN * f32            # double-buffered gallery column tile
    tcol_buf = 2 * TM * 128 * f32             # lane-padded label column
    trow_buf = 2 * 8 * TN * f32               # sublane-padded label row
    cmask_buf = 2 * 8 * TN * f32              # sublane-padded column mask
    scratch = 2 * TM * 128 * f32              # pos/neg accumulators (lane padded)
    interm = 10 * TM * TN * f32               # sim / scale / e / masks / temporaries
    need = col_buf + row_buf + tcol_buf + trow_buf + cmask_buf + scratch + interm
    need = int(need * 1.25) + (4 << 20)
    return min(max(need, 32 << 20), 56 << 20)


def _ms_loss_kernel(col_ref, tcol_ref, rowt_ref, trow_ref, cmask_ref,
                    out_ref, pos_acc, neg_acc):
    j = pl.program_id(1)

    @pl.when(j == 0)
    def _():
        pos_acc[...] = jnp.zeros_like(pos_acc)
        neg_acc[...] = jnp.zeros_like(neg_acc)

    # Standard [TM, D] x [D, TN] MXU contraction (gallery pre-transposed in the
    # wrapper), f32 accumulate.
    sim = jnp.dot(col_ref[...], rowt_ref[...],
                  preferred_element_type=jnp.float32)        # (TM, TN)

    same = tcol_ref[...] == trow_ref[...]                    # (TM, TN) label match
    col_valid = cmask_ref[...] > 0.0                         # (1, TN) real gallery cols

    # Padded query rows / gallery cols carry sentinel labels (-1 / -2) that never
    # match, so pos_mask needs no extra padding test; neg_mask masks padded cols.
    pos_mask = jnp.logical_and(same, sim < (1.0 - EPSILON))
    neg_mask = jnp.logical_and(jnp.logical_not(same), col_valid)

    # pos/neg masks are disjoint -> one EUP exp with a pre-selected scale.
    scale = jnp.where(same, -SCALE_POS, SCALE_NEG)
    e = jnp.exp(scale * (sim - THRESH))

    pos_acc[...] += jnp.sum(jnp.where(pos_mask, e, 0.0), axis=1, keepdims=True)
    neg_acc[...] += jnp.sum(jnp.where(neg_mask, e, 0.0), axis=1, keepdims=True)

    @pl.when(j == pl.num_programs(1) - 1)
    def _():
        pos_sum = pos_acc[...]                                # (TM, 1)
        neg_sum = neg_acc[...]
        # Kept terms are strictly positive (>= exp(-60) for normalized inputs),
        # so sum > 0  <=>  at least one pair.  Rows lacking either side skip.
        valid = jnp.logical_and(pos_sum > 0.0, neg_sum > 0.0)
        pos_loss = (1.0 / SCALE_POS) * jnp.log(1.0 + pos_sum)
        neg_loss = (1.0 / SCALE_NEG) * jnp.log(1.0 + neg_sum)
        per_row = jnp.where(valid, pos_loss + neg_loss, 0.0)
        # Per-row-tile partial sum, written as a scalar to SMEM.
        out_ref[0, 0] = jnp.sum(per_row)


def multi_similarity_loss(inputs_col, targets_col, inputs_row, targets_row):
    """inputs_*: (B, D) float32 embeddings; targets_*: (B,) int labels."""
    B_col, D = inputs_col.shape
    B_row, D2 = inputs_row.shape
    assert D == D2

    # Lane-dense padding of the feature dim.
    D_pad = _round_up(D, 128)

    # Query-row tiling (parallel grid axis).
    B_col_pad = _round_up(B_col, 8)
    TM = min(B_col_pad, 128)
    B_col_pad = _round_up(B_col_pad, TM)
    num_row_tiles = B_col_pad // TM

    # Gallery-column tiling (trailing "arbitrary" streaming axis).
    B_row_pad = _round_up(B_row, 128)
    TN = min(B_row_pad, 512)
    B_row_pad = _round_up(B_row_pad, TN)
    num_col_tiles = B_row_pad // TN

    col = jnp.zeros((B_col_pad, D_pad), jnp.float32)
    col = col.at[:B_col, :D].set(inputs_col.astype(jnp.float32))
    row = jnp.zeros((B_row_pad, D_pad), jnp.float32)
    row = row.at[:B_row, :D].set(inputs_row.astype(jnp.float32))
    # One-time wrapper-side transpose: kernel sees the gallery as (D_pad, TN)
    # tiles and never needs an in-kernel relayout.
    row_t = row.T                                             # (D_pad, B_row_pad)

    # Sentinel labels on padded entries (-1 / -2 never match real labels or each
    # other); padded gallery columns are additionally masked via cmask.
    tcol = jnp.full((B_col_pad, 1), -1, jnp.int32)
    tcol = tcol.at[:B_col, 0].set(targets_col.astype(jnp.int32))
    trow = jnp.full((1, B_row_pad), -2, jnp.int32)
    trow = trow.at[0, :B_row].set(targets_row.astype(jnp.int32))
    cmask = jnp.zeros((1, B_row_pad), jnp.float32)
    cmask = cmask.at[0, :B_row].set(1.0)

    partials = pl.pallas_call(
        _ms_loss_kernel,
        out_shape=jax.ShapeDtypeStruct((num_row_tiles, 1), jnp.float32),
        grid_spec=pltpu.PrefetchScalarGridSpec(
            num_scalar_prefetch=0,
            grid=(num_row_tiles, num_col_tiles),
            in_specs=[
                pl.BlockSpec((TM, D_pad), lambda i, j: (i, 0)),   # query tile
                pl.BlockSpec((TM, 1), lambda i, j: (i, 0)),       # query labels
                pl.BlockSpec((D_pad, TN), lambda i, j: (0, j)),   # gallery^T col tile
                pl.BlockSpec((1, TN), lambda i, j: (0, j)),       # gallery labels
                pl.BlockSpec((1, TN), lambda i, j: (0, j)),       # column validity
            ],
            out_specs=pl.BlockSpec((1, 1), lambda i, j: (i, 0),
                                   memory_space=pltpu.MemorySpace.SMEM),
            scratch_shapes=[pltpu.VMEM((TM, 1), jnp.float32),     # pos accumulator
                            pltpu.VMEM((TM, 1), jnp.float32)],    # neg accumulator
        ),
        compiler_params=pltpu.CompilerParams(
            dimension_semantics=("parallel", "arbitrary"),
            vmem_limit_bytes=_vmem_limit_bytes(TM, TN, D_pad)),
    )(col, tcol, row_t, trow, cmask)

    return jnp.sum(partials) / jnp.float32(B_col)


def _reference(inputs_col, targets_col, inputs_row, targets_row):
    """Pure-JAX replica of the PyTorch forward (for verification only)."""
    B = inputs_col.shape[0]
    sim = inputs_col @ inputs_row.T
    total = 0.0
    n_used = 0
    for i in range(B):
        same = targets_row == targets_col[i]
        pos = sim[i][same & (sim[i] < 1 - EPSILON)]
        neg = sim[i][~same]
        if pos.size < 1 or neg.size < 1:
            continue
        pos_loss = (1.0 / SCALE_POS) * jnp.log(1 + jnp.sum(jnp.exp(-SCALE_POS * (pos - THRESH))))
        neg_loss = (1.0 / SCALE_NEG) * jnp.log(1 + jnp.sum(jnp.exp(SCALE_NEG * (neg - THRESH))))
        total = total + pos_loss + neg_loss
        n_used += 1
    if n_used == 0:
        return jnp.zeros([], jnp.float32)
    return total / B


if __name__ == "__main__":
    B, D = 8, 32
    key = jax.random.PRNGKey(0)
    k1, k2, k3 = jax.random.split(key, 3)

    # Deterministic, L2-normalized embeddings (typical metric-learning setup).
    emb_col = jax.random.normal(k1, (B, D), dtype=jnp.float32)
    emb_col = emb_col / jnp.linalg.norm(emb_col, axis=1, keepdims=True)
    emb_row = jax.random.normal(k2, (B, D), dtype=jnp.float32)
    emb_row = emb_row / jnp.linalg.norm(emb_row, axis=1, keepdims=True)

    # Labels drawn from a small set so positive pairs exist.
    labels = jax.random.randint(k3, (B,), 0, 3, dtype=jnp.int32)
    targets_col = labels
    targets_row = labels

    loss = multi_similarity_loss(emb_col, targets_col, emb_row, targets_row)
    loss = jax.block_until_ready(loss)

    ref = _reference(emb_col, targets_col, emb_row, targets_row)
    assert jnp.allclose(loss, ref, rtol=5e-5, atol=1e-6), (loss, ref)

    print("KERNEL_OK")
</pallas_src>

<mosaic_0001>
module attributes {stable_mosaic.version = 11 : i64} {
  func.func @_ms_loss_kernel(%arg0: i32, %arg1: i32, %arg2: memref<8x128xf32, #tpu.memory_space<vmem>>, %arg3: memref<8x1xi32, #tpu.memory_space<vmem>>, %arg4: memref<128x128xf32, #tpu.memory_space<vmem>>, %arg5: memref<1x128xi32, #tpu.memory_space<vmem>>, %arg6: memref<1x128xf32, #tpu.memory_space<vmem>>, %arg7: memref<1x1xf32, #tpu.memory_space<smem>>, %arg8: memref<8x1xf32, #tpu.memory_space<vmem>>, %arg9: memref<8x1xf32, #tpu.memory_space<vmem>>) attributes {dimension_semantics = [#tpu.dimension_semantics<parallel>, #tpu.dimension_semantics<arbitrary>], iteration_bounds = array<i64: 1, 1>, scalar_prefetch = 0 : i64, scratch_operands = 2 : i64, tpu.core_type = #tpu.core_type<tc>, window_params = [{transform_indices = @transform_0, window_bounds = array<i64: 8, 128>}, {transform_indices = @transform_1, window_bounds = array<i64: 8, 1>}, {transform_indices = @transform_2, window_bounds = array<i64: 128, 128>}, {transform_indices = @transform_3, window_bounds = array<i64: 1, 128>}, {transform_indices = @transform_4, window_bounds = array<i64: 1, 128>}, {transform_indices = @transform_5, window_bounds = array<i64: 1, 1>}]} {
    %c0_i32 = arith.constant 0 : i32
    %0 = arith.cmpi eq, %arg1, %c0_i32 : i32
    %1 = arith.extui %0 : i1 to i32
    %c0_i32_0 = arith.constant 0 : i32
    %2 = arith.cmpi ne, %1, %c0_i32_0 : i32
    scf.if %2 {
      %cst_30 = arith.constant 0.000000e+00 : f32
      %44 = vector.broadcast %cst_30 : f32 to vector<8x1xf32>
      %c0_31 = arith.constant 0 : index
      %c0_32 = arith.constant 0 : index
      %45 = vector.load %arg8[%c0_31, %c0_32] : memref<8x1xf32, #tpu.memory_space<vmem>>, vector<8x1xf32>
      tpu.vector_store %arg8[%c0_31, %c0_32], %44 {strides = array<i32>} : memref<8x1xf32, #tpu.memory_space<vmem>>, vector<8x1xf32>,
      %cst_33 = arith.constant 0.000000e+00 : f32
      %46 = vector.broadcast %cst_33 : f32 to vector<8x1xf32>
      %c0_34 = arith.constant 0 : index
      %c0_35 = arith.constant 0 : index
      %47 = vector.load %arg9[%c0_34, %c0_35] : memref<8x1xf32, #tpu.memory_space<vmem>>, vector<8x1xf32>
      tpu.vector_store %arg9[%c0_34, %c0_35], %46 {strides = array<i32>} : memref<8x1xf32, #tpu.memory_space<vmem>>, vector<8x1xf32>,
    } else {
    }
    %c0 = arith.constant 0 : index
    %c0_1 = arith.constant 0 : index
    %3 = vector.load %arg2[%c0, %c0_1] : memref<8x128xf32, #tpu.memory_space<vmem>>, vector<8x128xf32>
    %c0_2 = arith.constant 0 : index
    %c0_3 = arith.constant 0 : index
    %4 = vector.load %arg4[%c0_2, %c0_3] : memref<128x128xf32, #tpu.memory_space<vmem>>, vector<128x128xf32>
    %cst = arith.constant dense<0.000000e+00> : vector<8x128xf32>
    %5 = tpu.matmul %3, %4, %cst {dimension_numbers = #tpu.dot_dimension_numbers<[1], [0], [0], [1], [0, 0, 1, 1], [], []>} : vector<8x128xf32>, vector<128x128xf32>, vector<8x128xf32> -> vector<8x128xf32>
    %c0_4 = arith.constant 0 : index
    %c0_5 = arith.constant 0 : index
    %6 = vector.load %arg3[%c0_4, %c0_5] : memref<8x1xi32, #tpu.memory_space<vmem>>, vector<8x1xi32>
    %c0_6 = arith.constant 0 : index
    %c0_7 = arith.constant 0 : index
    %7 = vector.load %arg5[%c0_6, %c0_7] : memref<1x128xi32, #tpu.memory_space<vmem>>, vector<1x128xi32>
    %8 = vector.broadcast %6 : vector<8x1xi32> to vector<8x128xi32>
    %9 = vector.broadcast %7 : vector<1x128xi32> to vector<8x128xi32>
    %10 = arith.cmpi eq, %8, %9 : vector<8x128xi32>
    %c0_8 = arith.constant 0 : index
    %c0_9 = arith.constant 0 : index
    %11 = vector.load %arg6[%c0_8, %c0_9] : memref<1x128xf32, #tpu.memory_space<vmem>>, vector<1x128xf32>
    %cst_10 = arith.constant 0.000000e+00 : f32
    %12 = vector.broadcast %cst_10 : f32 to vector<1x128xf32>
    %13 = arith.cmpf ogt, %11, %12 : vector<1x128xf32>
    %cst_11 = arith.constant 0.999989986 : f32
    %14 = vector.broadcast %cst_11 : f32 to vector<8x128xf32>
    %15 = arith.cmpf olt, %5, %14 : vector<8x128xf32>
    %16 = arith.andi %10, %15 : vector<8x128xi1>
    %cst_12 = arith.constant dense<true> : vector<8x128xi1>
    %17 = arith.xori %10, %cst_12 : vector<8x128xi1>
    %18 = vector.broadcast %13 : vector<1x128xi1> to vector<8x128xi1>
    %19 = arith.andi %17, %18 : vector<8x128xi1>
    %cst_13 = arith.constant -2.000000e+00 : f32
    %cst_14 = arith.constant 4.000000e+01 : f32
    %20 = vector.broadcast %cst_13 : f32 to vector<8x128xf32>
    %21 = vector.broadcast %cst_14 : f32 to vector<8x128xf32>
    %22 = arith.select %10, %20, %21 : vector<8x128xi1>, vector<8x128xf32>
    %cst_15 = arith.constant 5.000000e-01 : f32
    %23 = vector.broadcast %cst_15 : f32 to vector<8x128xf32>
    %24 = arith.subf %5, %23 : vector<8x128xf32>
    %25 = arith.mulf %22, %24 : vector<8x128xf32>
    %26 = math.exp %25 : vector<8x128xf32>
    %c0_16 = arith.constant 0 : index
    %c0_17 = arith.constant 0 : index
    %27 = vector.load %arg8[%c0_16, %c0_17] : memref<8x1xf32, #tpu.memory_space<vmem>>, vector<8x1xf32>
    %cst_18 = arith.constant 0.000000e+00 : f32
    %28 = vector.broadcast %cst_18 : f32 to vector<8x128xf32>
    %29 = arith.select %16, %26, %28 : vector<8x128xi1>, vector<8x128xf32>
    %cst_19 = arith.constant dense<0.000000e+00> : vector<8xf32>
    %30 = vector.multi_reduction <add>, %29, %cst_19 [1] : vector<8x128xf32> to vector<8xf32>
    %31 = vector.shape_cast %30 : vector<8xf32> to vector<8x1xf32>
    %32 = arith.addf %27, %31 : vector<8x1xf32>
    %c0_20 = arith.constant 0 : index
    %c0_21 = arith.constant 0 : index
    %33 = vector.load %arg8[%c0_20, %c0_21] : memref<8x1xf32, #tpu.memory_space<vmem>>, vector<8x1xf32>
    tpu.vector_store %arg8[%c0_20, %c0_21], %32 {strides = array<i32>} : memref<8x1xf32, #tpu.memory_space<vmem>>, vector<8x1xf32>,
    %c0_22 = arith.constant 0 : index
    %c0_23 = arith.constant 0 : index
    %34 = vector.load %arg9[%c0_22, %c0_23] : memref<8x1xf32, #tpu.memory_space<vmem>>, vector<8x1xf32>
    %cst_24 = arith.constant 0.000000e+00 : f32
    %35 = vector.broadcast %cst_24 : f32 to vector<8x128xf32>
    %36 = arith.select %19, %26, %35 : vector<8x128xi1>, vector<8x128xf32>
    %cst_25 = arith.constant dense<0.000000e+00> : vector<8xf32>
    %37 = vector.multi_reduction <add>, %36, %cst_25 [1] : vector<8x128xf32> to vector<8xf32>
    %38 = vector.shape_cast %37 : vector<8xf32> to vector<8x1xf32>
    %39 = arith.addf %34, %38 : vector<8x1xf32>
    %c0_26 = arith.constant 0 : index
    %c0_27 = arith.constant 0 : index
    %40 = vector.load %arg9[%c0_26, %c0_27] : memref<8x1xf32, #tpu.memory_space<vmem>>, vector<8x1xf32>
    tpu.vector_store %arg9[%c0_26, %c0_27], %39 {strides = array<i32>} : memref<8x1xf32, #tpu.memory_space<vmem>>, vector<8x1xf32>,
    %c0_i32_28 = arith.constant 0 : i32
    %41 = arith.cmpi eq, %arg1, %c0_i32_28 : i32
    %42 = arith.extui %41 : i1 to i32
    %c0_i32_29 = arith.constant 0 : i32
    %43 = arith.cmpi ne, %42, %c0_i32_29 : i32
    scf.if %43 {
      %c0_30 = arith.constant 0 : index
      %c0_31 = arith.constant 0 : index
      %44 = vector.load %arg8[%c0_30, %c0_31] : memref<8x1xf32, #tpu.memory_space<vmem>>, vector<8x1xf32>
      %c0_32 = arith.constant 0 : index
      %c0_33 = arith.constant 0 : index
      %45 = vector.load %arg9[%c0_32, %c0_33] : memref<8x1xf32, #tpu.memory_space<vmem>>, vector<8x1xf32>
      %cst_34 = arith.constant 0.000000e+00 : f32
      %46 = vector.broadcast %cst_34 : f32 to vector<8x1xf32>
      %47 = arith.cmpf ogt, %44, %46 : vector<8x1xf32>
      %cst_35 = arith.constant 0.000000e+00 : f32
      %48 = vector.broadcast %cst_35 : f32 to vector<8x1xf32>
      %49 = arith.cmpf ogt, %45, %48 : vector<8x1xf32>
      %50 = arith.andi %47, %49 : vector<8x1xi1>
      %cst_36 = arith.constant 1.000000e+00 : f32
      %51 = vector.broadcast %cst_36 : f32 to vector<8x1xf32>
      %52 = arith.addf %51, %44 : vector<8x1xf32>
      %53 = math.log %52 : vector<8x1xf32>
      %cst_37 = arith.constant 5.000000e-01 : f32
      %54 = vector.broadcast %cst_37 : f32 to vector<8x1xf32>
      %55 = arith.mulf %54, %53 : vector<8x1xf32>
      %cst_38 = arith.constant 1.000000e+00 : f32
      %56 = vector.broadcast %cst_38 : f32 to vector<8x1xf32>
      %57 = arith.addf %56, %45 : vector<8x1xf32>
      %58 = math.log %57 : vector<8x1xf32>
      %cst_39 = arith.constant 2.500000e-02 : f32
      %59 = vector.broadcast %cst_39 : f32 to vector<8x1xf32>
      %60 = arith.mulf %59, %58 : vector<8x1xf32>
      %61 = arith.addf %55, %60 : vector<8x1xf32>
      %cst_40 = arith.constant 0.000000e+00 : f32
      %62 = vector.broadcast %cst_40 : f32 to vector<8x1xf32>
      %63 = arith.select %50, %61, %62 : vector<8x1xi1>, vector<8x1xf32>
      %64 = vector.shape_cast %63 : vector<8x1xf32> to vector<1x8x1xf32>
      %cst_41 = arith.constant dense<0.000000e+00> : vector<1xf32>
      %65 = vector.multi_reduction <add>, %64, %cst_41 [1, 2] : vector<1x8x1xf32> to vector<1xf32>
      %66 = vector.shape_cast %65 : vector<1xf32> to vector<1x1x1xf32>
      %67 = vector.extract %66[0, 0, 0] : f32 from vector<1x1x1xf32>
      %c0_42 = arith.constant 0 : index
      %c0_43 = arith.constant 0 : index
      %68 = memref.load %arg7[%c0_42, %c0_43] : memref<1x1xf32, #tpu.memory_space<smem>>
      memref.store %67, %arg7[%c0_42, %c0_43] : memref<1x1xf32, #tpu.memory_space<smem>>
    } else {
    }
    return
  }
  func.func @transform_0(%arg0: i32, %arg1: i32) -> (i32, i32) {
    %c0_i32 = arith.constant 0 : i32
    %c0_i32_0 = arith.constant 0 : i32
    return %arg0, %c0_i32 : i32, i32
  }
  func.func @transform_1(%arg0: i32, %arg1: i32) -> (i32, i32) {
    %c0_i32 = arith.constant 0 : i32
    %c0_i32_0 = arith.constant 0 : i32
    return %arg0, %c0_i32 : i32, i32
  }
  func.func @transform_2(%arg0: i32, %arg1: i32) -> (i32, i32) {
    %c0_i32 = arith.constant 0 : i32
    %c0_i32_0 = arith.constant 0 : i32
    return %c0_i32, %arg1 : i32, i32
  }
  func.func @transform_3(%arg0: i32, %arg1: i32) -> (i32, i32) {
    %c0_i32 = arith.constant 0 : i32
    %c0_i32_0 = arith.constant 0 : i32
    return %c0_i32, %arg1 : i32, i32
  }
  func.func @transform_4(%arg0: i32, %arg1: i32) -> (i32, i32) {
    %c0_i32 = arith.constant 0 : i32
    %c0_i32_0 = arith.constant 0 : i32
    return %c0_i32, %arg1 : i32, i32
  }
  func.func @transform_5(%arg0: i32, %arg1: i32) -> (i32, i32) {
    %c0_i32 = arith.constant 0 : i32
    %c0_i32_0 = arith.constant 0 : i32
    return %arg0, %c0_i32 : i32, i32
  }
}

</mosaic_0001>

<bundles_post_ra>
// kernel: tpu_custom_call.1
= control target key start
LH: loop header
LB: loop body
LE: loop exit
PB: predicated region body
PF: predicated region fallthrough
CT: control target
= control target key end

     0   :  { %10 = vsyncpa [#allocation5], 0  ;;  %s430_s0 = inlined_call_operand.vmem [shape: f32[8,128], index: 0, kind: input, shape index: {}]   ;;  %s431_s1 = inlined_call_operand.vmem [shape: s32[8,1], index: 1, kind: input, shape index: {}]   ;;  %s432_s2 = inlined_call_operand.hbm [shape: f32[128,128], index: 2, kind: input, shape index: {}]   ;;  %s433_s3 = inlined_call_operand.vmem [shape: s32[1,128], index: 3, kind: input, shape index: {}]   ;;  %s434_s4 = inlined_call_operand.vmem [shape: f32[1,128], index: 4, kind: input, shape index: {}]   ;;  %s435_s5 = inlined_call_operand.hbm [shape: f32[1,1], index: 5, kind: output, shape index: {}]  }
   0x1   :  { %11 = vsyncpa [#allocation6], 0  ;;  %s346_s18 = smov [#allocation4]   ;;  %s310_s22 = scalar_lea.hbm %s432_s2, 2048 }
   0x2   :  { %s21_s19 = sshll.u32 %s346_s18, 4  ;;  %p311_p0 = scmp.ne.s32.totalorder %s432_s2, %s310_s22  ;;  %s22_s19 = int_to_ptr.vmem [resolvable:$true] %s21_s19 }
   0x3   :  { %p314_p1 = scmp.lt.u32.totalorder %s310_s22, %s432_s2 }
   0x5   :  { %p316_p2 = pnand %p314_p1, %p311_p0 }
   0x7   :  { %319 = shalt.err (!%p316_p2)
}
   0x8   :  { %s320_s27 = scalar_lea.vmem %s22_s19, 2048  ;;  %p325_p4 = scmp.lt.s32.totalorder %s22_s19, %s22_s19 }
   0x9   :  { %p321_p3 = scmp.ne.s32.totalorder %s22_s19, %s320_s27  ;;  %p326_p5 = scmp.lt.s32.totalorder %s320_s27, %s320_s27 }
   0xb   :  { %p327_p6 = por %p326_p5, %p325_p4 }
   0xd   :  { %p328_p7 = pnand %p327_p6, %p321_p3 }
   0xf   :  { %331 = shalt.err (!%p328_p7)
}
  0x10   :  { %s347_s28 = smov 128   ;;  %s348_s29 = smov 8  }
  0x11   :  { %27 = dma.hbm_to_vmem [thread:$0]  %s432_s2, 2048, %s22_s19, [#allocation5], %s347_s28, %s347_s28, %s348_s29  }
  0x12   :  { %342 = dma.done.wait [#allocation5], 2048  }
  0x13   :  { %343 = vsyncadd [#allocation5], 4294965248  ;;  %vm39_vm0 = vcmask 7168   ;;  %v349_v0 = vmov 0.0|0.0   ;;  %v350_v1 = vmov 0.0   ;;  %vm351_vm1 = vmmov 0  }
  0x14   :  { %267 = vmatprep.subr.bf16.mxu0 %v349_v0  ;;  %40 = vst.msk [vmem:[#allocation2] sm:$0xff] %vm39_vm0, %v350_v1  ;;  %41 = vst.msk [vmem:[#allocation3] sm:$0xff] %vm39_vm0, %v350_v1  ;;  %264 = vmatprep.mubr.msk.f32.mxu0 %vm351_vm1, %v350_v1  ;;  %v352_v2 = vmov 0   ;;  %v43_v3 = vld [vmem:[#allocation4] sm:$0xff]  ;;  %v44_v4 = vld [vmem:[#allocation4 + $0x8] sm:$0xff]  ;;  %v145_v31 = vlaneseq  ;;  %v353_v33 = vmov 40.0  }
  0x15   :  { %303 = vset.pattern.permute.xlu0 %v352_v2  ;;  %v45_v5 = vld [vmem:[#allocation4 + $0x10] sm:$0xff]  ;;  %v268_v6 = vpack.c.bf16 %v44_v4, %v43_v3  ;;  %v46_v7 = vld [vmem:[#allocation4 + $0x18] sm:$0xff]  ;;  %v47_v9 = vld [vmem:[#allocation4 + $0x20] sm:$0xff]  ;;  %vm354_vm4 = vmmov 1   ;;  %s332_s13 = scalar_lea.hbm %s435_s5, 16 }
  0x16   :  { %v271_v8 = vpack.c.bf16 %v46_v7, %v45_v5  ;;  %v48_v10 = vld [vmem:[#allocation4 + $0x28] sm:$0xff]  ;;  %v129_v11 = vld [vmem:[%s431_s1] sm:$0xff]  ;;  %v50_v14 = vld [vmem:[#allocation4 + $0x38] sm:$0xff]  ;;  %v146_v38 = vshrl.u32 %v145_v31, 7  ;;  %p333_p8 = scmp.ne.s32.totalorder %s435_s5, %s332_s13  ;;  %p336_p9 = scmp.lt.u32.totalorder %s332_s13, %s435_s5 }
  0x17   :  { %269 = vmatpush3.bf16.msra.mxu0 %v268_v6  ;;  %v274_v12 = vpack.c.bf16 %v48_v10, %v47_v9  ;;  %132 = vperm.xlu0 %303, %v129_v11   ;;  %v49_v13 = vld [vmem:[#allocation4 + $0x30] sm:$0xff]  ;;  %v51_v16 = vld [vmem:[#allocation4 + $0x40] sm:$0xff]  ;;  %v52_v17 = vld [vmem:[#allocation4 + $0x48] sm:$0xff] }
  0x18   :  { %270 = vmatprep.subr.bf16.mxu0 %v349_v0  ;;  %v277_v15 = vpack.c.bf16 %v50_v14, %v49_v13  ;;  %v280_v18 = vpack.c.bf16 %v52_v17, %v51_v16  ;;  %v53_v19 = vld [vmem:[#allocation4 + $0x50] sm:$0xff]  ;;  %v54_v20 = vld [vmem:[#allocation4 + $0x58] sm:$0xff]  ;;  %v55_v22 = vld [vmem:[#allocation4 + $0x60] sm:$0xff]  ;;  %v147_v41 = vsub.s32 0, %v146_v38  ;;  %p338_p10 = pnand %p336_p9, %p333_p8 }
  0x19   :  { %v283_v21 = vpack.c.bf16 %v54_v20, %v53_v19  ;;  %v56_v23 = vld [vmem:[#allocation4 + $0x68] sm:$0xff]  ;;  %v57_v25 = vld [vmem:[#allocation4 + $0x70] sm:$0xff]  ;;  %v58_v26 = vld [vmem:[#allocation4 + $0x78] sm:$0xff] }
  0x1a   :  { %v286_v24 = vpack.c.bf16 %v56_v23, %v55_v22  ;;  %v289_v27 = vpack.c.bf16 %v58_v26, %v57_v25  ;;  %v42_v28 = vld [vmem:[%s430_s0] sm:$0xff] }
  0x1b   :  { %272 = vmatpush3.bf16.msra.mxu0 %v271_v8  ;;  %v213_v29 = vld [vmem:[%s433_s3] ss:$0 sm:$0xff]  ;;  %v163_v47 = vld [vmem:[#allocation3] sm:$0xff] }
  0x1c   :  { %273 = vmatprep.subr.bf16.mxu0 %v349_v0  ;;  %v139_v32 = vld [vmem:[%s434_s4] sm:$0x1] }
  0x1d   :  { %vm140_vm3 = vcmp.gt.f32.partialorder %v139_v32, 0.0  ;;  %v156_v48 = vld [vmem:[#allocation2] sm:$0xff] }
  0x1e   :  { %v144_v42 = vsel %vm140_vm3, 1, %v352_v2 }
  0x1f   :  { %275 = vmatpush3.bf16.msra.mxu0 %v274_v12  ;;  %v148_v43 = vrot.slane %v144_v42, %v147_v41 }
  0x20   :  { %276 = vmatprep.subr.bf16.mxu0 %v349_v0 }
  0x21   :  { %vm149_vm6 = vcmp.eq.s32.totalorder %v148_v43, 1 }
  0x23   :  { %278 = vmatpush3.bf16.msra.mxu0 %v277_v15 }
  0x24   :  { %279 = vmatprep.subr.bf16.mxu0 %v349_v0 }
  0x27   :  { %281 = vmatpush3.bf16.msra.mxu0 %v280_v18 }
  0x28   :  { %282 = vmatprep.subr.bf16.mxu0 %v349_v0 }
  0x2b   :  { %284 = vmatpush3.bf16.msra.mxu0 %v283_v21 }
  0x2c   :  { %285 = vmatprep.subr.bf16.mxu0 %v349_v0 }
  0x2f   :  { %287 = vmatpush3.bf16.msra.mxu0 %v286_v24 }
  0x30   :  { %288 = vmatprep.subr.bf16.mxu0 %v349_v0 }
  0x33   :  { %290 = vmatpush3.bf16.msra.mxu0 %v289_v27 }
  0x36   :  { %265 = vmatmul.mubr.f32.vlgmr.msra.gmra.mrb[0].mxu0 %v42_v28 }
  0x96   :  { %v133_v30 = vpop.permute.xlu0 %132 }
  0x97   :  { %vm138_vm2 = vcmp.eq.s32.totalorder %v133_v30, %v213_v29 }
  0x98   :  { %v151_v34 = vsel %vm138_vm2, -2.0, %v353_v33  ;;  %vm143_vm5 = vmxor %vm138_vm2, %vm354_vm4 }
  0x99   :  { %vm150_vm8 = vmand %vm143_vm5, %vm149_vm6 }
 0x109   :  { %v125_v35 = vpop.f32.mrb[0].mxu0 }
 0x10a   :  { %v214_v36 = vadd.f32 -0.5, %v125_v35  ;;  %v266_v37 = vpop.f32.mrb[1].mxu0  ;;  %vm141_vm7 = vcmp.lt.f32.partialorder %v125_v35, 0.99999 }
 0x10b   :  { %vm142_vm9 = vmand %vm138_vm2, %vm141_vm7 }
 0x10c   :  { %v153_v39 = vmul.f32 %v214_v36, %v151_v34 }
 0x10e   :  { %v154_v40 = vmul.f32 1.442695, %v153_v39 }
 0x110   :  { %304 = vpow2.f32 %v154_v40 }
 0x11a   :  { %v305_v44 = vpop.eup %304 }
 0x11b   :  { %v164_v45 = vsel %vm150_vm8, %v305_v44, 0.0  ;;  %v157_v46 = vsel %vm142_vm9, %v305_v44, 0.0 }
 0x11c   :  { %165 = vadd.xlane.f32.xlu1 %v164_v45  ;;  %158 = vadd.xlane.f32.xlu0 %v157_v46 }
 0x1a9   :  { %v166_v49 = vpop.xlane.xlu1 %165  ;;  %v159_v50 = vpop.xlane.xlu0 %158 }
 0x1aa   :  { %v167_v51 = vadd.f32 %v166_v49, %v163_v47  ;;  %v160_v52 = vadd.f32 %v159_v50, %v156_v48 }
 0x1ac   :  { %168 = vst.msk [vmem:[#allocation3] sm:$0xff] %vm39_vm0, %v167_v51  ;;  %162 = vst.msk [vmem:[#allocation2] sm:$0xff] %vm39_vm0, %v160_v52 }
 0x1b3   :  { %v172_v53 = vld [vmem:[#allocation2] sm:$0xff]  ;;  %v173_v54 = vld [vmem:[#allocation3] sm:$0xff] }
 0x1b4   :  { %v177_v55 = vadd.f32 1.0, %v172_v53  ;;  %v181_v56 = vadd.f32 1.0, %v173_v54  ;;  %vm174_vm10 = vcmp.gt.f32.partialorder %v172_v53, 0.0  ;;  %vm175_vm11 = vcmp.gt.f32.partialorder %v173_v54, 0.0 }
 0x1b5   :  { %vm176_vm12 = vmand %vm174_vm10, %vm175_vm11 }
 0x1b6   :  { %306 = vlog2.f32 %v177_v55 }
 0x1b7   :  { %308 = vlog2.f32 %v181_v56 }
 0x1c0   :  { %v307_v57 = vpop.eup %306 }
 0x1c1   :  { %v309_v58 = vpop.eup %308  ;;  %v179_v59 = vmul.f32 0.6931472, %v307_v57 }
 0x1c2   :  { %v183_v60 = vmul.f32 0.6931472, %v309_v58 }
 0x1c3   :  { %v180_v61 = vmul.f32 0.5, %v179_v59 }
 0x1c4   :  { %v184_v62 = vmul.f32 0.025, %v183_v60 }
 0x1c6   :  { %v185_v63 = vadd.f32 %v184_v62, %v180_v61 }
 0x1c8   :  { %v186_v0 = vsel %vm176_vm12, %v185_v63, 0.0 }
 0x1c9   :  { %v187_v1 = vsel %vm39_vm0, %v186_v0, 0.0 }
 0x1ca   :  { %188 = vadd.xlane.f32.xlu1 %v187_v1 }
 0x257   :  { %v189_v2 = vpop.xlane.xlu1 %188 }
 0x258   :  { %v190_v3 = vrot.slane %v189_v2, 4 }
 0x25a   :  { %v191_v4 = vadd.f32 %v190_v3, %v189_v2 }
 0x25c   :  { %v192_v5 = vrot.slane %v191_v4, 2 }
 0x25e   :  { %v193_v6 = vadd.f32 %v192_v5, %v191_v4 }
 0x260   :  { %v194_v7 = vrot.slane %v193_v6, 1 }
 0x262   :  { %v195_v8 = vadd.f32 %v194_v7, %v193_v6 }
 0x264   :  { %291 = vpush %v195_v8 }
 0x295   :  { %s292_s0 = spop %291 }
 0x296   :  { %198 = sst [smem:[#allocation7]] %s292_s0 }
 0x297   :  { %341 = shalt.err (!%p338_p10)
}
 0x298   :  { %s355_s18 = smov [#allocation7]  }
 0x299   :  { %206 = dma.smem_to_hbm %s355_s18, 16, %s435_s5, [#allocation6]  }
 0x29a   :  { %344 = dma.done.wait [#allocation6], 16  }
 0x29b   :  { %345 = vsyncadd [#allocation6], 4294967280 }
 0x29c   :  { %210 = sfence }
 0x29d   :  { %211 = vsyncpa [#allocation5], 1 }
 0x29e   :  { %212 = vsyncpa [#allocation6], 1 }

</bundles_post_ra>
